<compile_context>
chip_gen: v7x
topology: tpu7x:2x2x1
jax: 0.10.0
libtpu: 0.0.40
codegen_flags: <defaults>
</compile_context>

<pallas_src>
import functools
import math

import jax
import jax.numpy as jnp
from jax.experimental import pallas as pl
from jax.experimental.pallas import tpu as pltpu


_SQRT_2_OVER_PI = math.sqrt(2.0 / math.pi)


def _gelu_tanh(x):
    # GELU with tanh approximation, matching torch.nn.GELU(approximate='tanh').
    return 0.5 * x * (1.0 + jnp.tanh(_SQRT_2_OVER_PI * (x + 0.044715 * x * x * x)))


def _round_up(x, m):
    return ((x + m - 1) // m) * m


def _cdiv(a, b):
    return -(-a // b)


# ----------------------------------------------------------------------------
# Kernels
# ----------------------------------------------------------------------------

def _mlp_resident_kernel(x_ref, w1_ref, b1_ref, w2_ref, b2_ref, o_ref):
    """Weights fully resident in VMEM; 1-D grid over row tiles."""
    h = jnp.dot(x_ref[...], w1_ref[...], preferred_element_type=jnp.float32)
    h = _gelu_tanh(h + b1_ref[...].astype(jnp.float32))
    out = jnp.dot(h.astype(w2_ref.dtype), w2_ref[...],
                  preferred_element_type=jnp.float32)
    o_ref[...] = (out + b2_ref[...].astype(jnp.float32)).astype(o_ref.dtype)


def _mlp_streaming_kernel(x_ref, w1_ref, b1_ref, w2_ref, b2_ref, o_ref, acc_ref,
                          *, num_hidden_tiles):
    """Hidden dim streamed in (C, th)/(th, C) slices; 2-D grid (rows, hidden).

    acc_ref: (tm, C) f32 scratch, resident across the hidden (reduction) axis.
    Epilogue is fused into the last hidden step (no extra acc store/reload).
    """
    k = pl.program_id(1)

    h = jnp.dot(x_ref[...], w1_ref[...], preferred_element_type=jnp.float32)
    h = _gelu_tanh(h + b1_ref[...].astype(jnp.float32))
    partial = jnp.dot(h.astype(w2_ref.dtype), w2_ref[...],
                      preferred_element_type=jnp.float32)

    if num_hidden_tiles == 1:
        o_ref[...] = (partial + b2_ref[...].astype(jnp.float32)).astype(o_ref.dtype)
        return

    @pl.when(k == 0)
    def _():
        acc_ref[...] = partial

    @pl.when(jnp.logical_and(k > 0, k < num_hidden_tiles - 1))
    def _():
        acc_ref[...] += partial

    @pl.when(k == num_hidden_tiles - 1)
    def _():
        o_ref[...] = (acc_ref[...] + partial
                      + b2_ref[...].astype(jnp.float32)).astype(o_ref.dtype)


# ----------------------------------------------------------------------------
# Tiling / device heuristics
# ----------------------------------------------------------------------------

def _device_defaults():
    """(tm_target, th_target, vmem_budget_bytes) per TPU generation."""
    kind = ""
    try:
        kind = jax.devices()[0].device_kind.lower()
    except Exception:
        pass
    if "v5 lite" in kind or "v5e" in kind or "v5lite" in kind:
        # v5e: roofline crossover ~240 FLOPs/byte -> tm~256-384 already suffices.
        return 384, 512, 96 * 1024 * 1024
    if "v6" in kind:
        # v6e: 128 MiB VMEM, crossover ~670 FLOPs/byte -> big row tiles.
        return 1024, 1024, 100 * 1024 * 1024
    if "v7" in kind:
        # v7x: 64 MiB VMEM (tm is VMEM-capped) but ~2.3x HBM BW.
        return 512, 512, 48 * 1024 * 1024
    # Unknown generation: conservative budget that fits 64 MiB VMEM.
    return 512, 512, 48 * 1024 * 1024


def _resident_vmem_bytes(tm, C, H, x_isz, w_isz, o_isz):
    # Count everything double-buffered (conservative).
    return (2 * tm * C * x_isz + 2 * tm * C * o_isz
            + 2 * C * H * w_isz + 2 * H * C * w_isz
            + 2 * 8 * H * 4 + 2 * 8 * C * 4)


def _streaming_vmem_bytes(tm, th, C, x_isz, w_isz, o_isz):
    return (2 * tm * C * x_isz + 2 * tm * C * o_isz
            + 2 * C * th * w_isz + 2 * th * C * w_isz
            + 2 * 8 * th * 4 + 2 * 8 * C * 4
            + tm * C * 4)  # f32 accumulator scratch


# ----------------------------------------------------------------------------
# Wrapper
# ----------------------------------------------------------------------------

def mlp_pallas(x, w1, b1, w2, b2, *, tm_target=None, th_target=None,
               vmem_budget=None, force_path=None, interpret=False):
    """x: (..., C); w1: (C, H); b1: (H,); w2: (H, C); b2: (C,)."""
    orig_shape = x.shape
    C = x.shape[-1]
    H = w1.shape[1]
    assert w1.shape == (C, H) and w2.shape == (H, C)
    assert b1.shape == (H,) and b2.shape == (C,)
    M = int(math.prod(orig_shape[:-1]))

    d_tm, d_th, d_vmem = _device_defaults()
    tm_target = d_tm if tm_target is None else tm_target
    th_target = d_th if th_target is None else th_target
    vmem_budget = d_vmem if vmem_budget is None else vmem_budget
    try:  # never ask for more scoped VMEM than the chip physically has
        cap = int(pltpu.get_tpu_info().vmem_capacity_bytes)
        vmem_budget = min(vmem_budget, int(cap * 0.75))
    except Exception:
        pass

    out_dtype = x.dtype
    x_isz = jnp.dtype(x.dtype).itemsize
    w_isz = jnp.dtype(w1.dtype).itemsize
    o_isz = jnp.dtype(out_dtype).itemsize

    x2 = x.reshape(M, C)

    # --- Row tile: sublane-aligned, pads M (no full-dim fallback), and keeps
    #     >= 2 row tiles when possible so "parallel" can use both v7x cores.
    row_align = 16 if x_isz < 4 else 8
    tm = _round_up(max(row_align, min(tm_target, _round_up(M, row_align))), row_align)
    if M > row_align and _cdiv(M, tm) < 2:
        tm = _round_up(_cdiv(M, 2), row_align)

    # --- Hidden tile: lane-aligned (multiple of 128).
    th = _round_up(max(128, min(th_target, _round_up(H, 128))), 128)

    # --- Path selection: weights fully resident if they fit the VMEM budget.
    use_resident = (force_path != "streaming") and (
        force_path == "resident"
        or _resident_vmem_bytes(tm, C, H, x_isz, w_isz, o_isz) <= vmem_budget)

    # --- Shrink tiles until the estimated footprint fits the budget.
    if use_resident:
        while tm > row_align and _resident_vmem_bytes(
                tm, C, H, x_isz, w_isz, o_isz) > vmem_budget:
            tm = max(row_align, _round_up(tm // 2, row_align))
    else:
        while tm > row_align and _streaming_vmem_bytes(
                tm, th, C, x_isz, w_isz, o_isz) > vmem_budget:
            tm = max(row_align, _round_up(tm // 2, row_align))
        while th > 128 and _streaming_vmem_bytes(
                tm, th, C, x_isz, w_isz, o_isz) > vmem_budget:
            th = max(128, _round_up(th // 2, 128))

    # --- Pad M (and H for the streaming path) to tile multiples.
    M_pad = _round_up(M, tm)
    H_pad = H if use_resident else _round_up(H, th)
    if M_pad != M:
        x2 = jnp.pad(x2, ((0, M_pad - M), (0, 0)))
    if H_pad != H:
        # Zero-padded W2 rows contribute zero regardless of the padded h values.
        w1 = jnp.pad(w1, ((0, 0), (0, H_pad - H)))
        b1 = jnp.pad(b1, ((0, H_pad - H),))
        w2 = jnp.pad(w2, ((0, H_pad - H), (0, 0)))
    b1_2 = b1.reshape(1, H_pad)
    b2_2 = b2.reshape(1, C)

    n_row = M_pad // tm

    if use_resident:
        grid = (n_row,)
        in_specs = [
            pl.BlockSpec((tm, C), lambda i: (i, 0)),       # x row tile
            pl.BlockSpec((C, H_pad), lambda i: (0, 0)),    # W1 (resident)
            pl.BlockSpec((1, H_pad), lambda i: (0, 0)),    # b1
            pl.BlockSpec((H_pad, C), lambda i: (0, 0)),    # W2 (resident)
            pl.BlockSpec((1, C), lambda i: (0, 0)),        # b2
        ]
        out_specs = pl.BlockSpec((tm, C), lambda i: (i, 0))
        scratch_shapes = ()
        kernel = _mlp_resident_kernel
        dim_sem = ("parallel",)
        weight_reads = 1
    else:
        n_hid = H_pad // th
        grid = (n_row, n_hid)  # rows: parallel; hidden: reduction (last)
        in_specs = [
            pl.BlockSpec((tm, C), lambda i, k: (i, 0)),    # x row tile
            pl.BlockSpec((C, th), lambda i, k: (0, k)),    # W1 hidden slice
            pl.BlockSpec((1, th), lambda i, k: (0, k)),    # b1 hidden slice
            pl.BlockSpec((th, C), lambda i, k: (k, 0)),    # W2 hidden slice
            pl.BlockSpec((1, C), lambda i, k: (0, 0)),     # b2
        ]
        out_specs = pl.BlockSpec((tm, C), lambda i, k: (i, 0))
        scratch_shapes = (pltpu.VMEM((tm, C), jnp.float32),)
        kernel = functools.partial(_mlp_streaming_kernel, num_hidden_tiles=n_hid)
        dim_sem = ("parallel", "arbitrary")
        weight_reads = n_row  # W1/W2 re-streamed once per row tile

    bytes_accessed = int(
        M_pad * C * x_isz                                  # x read
        + M_pad * C * o_isz                                # out write
        + weight_reads * (w1.size + w2.size) * w_isz       # weight (re-)streaming
        + weight_reads * (b1.size + b2.size) * w_isz)
    cost = pl.CostEstimate(
        flops=int(4 * M_pad * H_pad * C),                  # two matmuls: 2*M*H*C each
        transcendentals=int(M_pad * H_pad),                # tanh per hidden activation
        bytes_accessed=bytes_accessed)

    out = pl.pallas_call(
        kernel,
        out_shape=jax.ShapeDtypeStruct((M_pad, C), out_dtype),
        grid_spec=pltpu.PrefetchScalarGridSpec(
            num_scalar_prefetch=0,
            grid=grid,
            in_specs=in_specs,
            out_specs=out_specs,
            scratch_shapes=scratch_shapes,
        ),
        compiler_params=pltpu.CompilerParams(
            dimension_semantics=dim_sem,
            vmem_limit_bytes=int(vmem_budget),
        ),
        cost_estimate=cost,
        interpret=interpret,
    )(x2, w1, b1_2, w2, b2_2)

    if M_pad != M:
        out = out[:M]
    return out.reshape(orig_shape)


# ----------------------------------------------------------------------------
# Reference + test harness
# ----------------------------------------------------------------------------

def mlp_reference(x, w1, b1, w2, b2):
    f32 = jnp.float32
    hp = jax.lax.Precision.HIGHEST
    h = jnp.dot(x.astype(f32), w1.astype(f32), precision=hp) + b1.astype(f32)
    h = _gelu_tanh(h)
    return jnp.dot(h, w2.astype(f32), precision=hp) + b2.astype(f32)


def _make_inputs(key, B, T, C, dtype):
    H = 4 * C
    kx, kw1, kb1, kw2, kb2 = jax.random.split(key, 5)
    x = jax.random.normal(kx, (B, T, C), jnp.float32).astype(dtype)
    w1 = (jax.random.normal(kw1, (C, H), jnp.float32) / math.sqrt(C)).astype(dtype)
    b1 = (jax.random.normal(kb1, (H,), jnp.float32) * 0.01).astype(dtype)
    w2 = (jax.random.normal(kw2, (H, C), jnp.float32) / math.sqrt(H)).astype(dtype)
    b2 = (jax.random.normal(kb2, (C,), jnp.float32) * 0.01).astype(dtype)
    return x, w1, b1, w2, b2


if __name__ == "__main__":
    k0, k1, k2 = jax.random.split(jax.random.PRNGKey(0), 3)

    # 1) Small config matching the module (batch=2, seq=8, n_embd=32 -> H=128),
    #    f32, weights-resident fast path.
    x, w1, b1, w2, b2 = _make_inputs(k0, 2, 8, 32, jnp.float32)
    out = jax.block_until_ready(mlp_pallas(x, w1, b1, w2, b2))
    ref = mlp_reference(x, w1, b1, w2, b2)
    assert out.shape == x.shape
    assert jnp.allclose(out, ref, atol=1e-4, rtol=1e-4), "resident f32 mismatch"

    # 2) Non-divisible row count (M=50) -> exercises row padding + >=2 row tiles.
    x, w1, b1, w2, b2 = _make_inputs(k1, 2, 25, 32, jnp.float32)
    out = jax.block_until_ready(mlp_pallas(x, w1, b1, w2, b2))
    ref = mlp_reference(x, w1, b1, w2, b2)
    assert jnp.allclose(out, ref, atol=1e-4, rtol=1e-4), "padded resident mismatch"

    # 3) bf16, forced hidden-streaming path (multi-tile reduction, fused
    #    epilogue, padded rows: M=144 -> tm=64 -> M_pad=192, H=512/th=128).
    x, w1, b1, w2, b2 = _make_inputs(k2, 2, 72, 128, jnp.bfloat16)
    out = jax.block_until_ready(
        mlp_pallas(x, w1, b1, w2, b2, tm_target=64, th_target=128,
                   force_path="streaming"))
    ref = mlp_reference(x, w1, b1, w2, b2)
    assert jnp.allclose(out.astype(jnp.float32), ref, atol=5e-2, rtol=5e-2), \
        "streaming bf16 mismatch"

    print("KERNEL_OK")
</pallas_src>

<mosaic_0001>
module attributes {stable_mosaic.version = 11 : i64} {
  func.func @_mlp_resident_kernel(%arg0: i32, %arg1: memref<8x32xf32, #tpu.memory_space<vmem>>, %arg2: memref<32x128xf32, #tpu.memory_space<vmem>>, %arg3: memref<1x128xf32, #tpu.memory_space<vmem>>, %arg4: memref<128x32xf32, #tpu.memory_space<vmem>>, %arg5: memref<1x32xf32, #tpu.memory_space<vmem>>, %arg6: memref<8x32xf32, #tpu.memory_space<vmem>>) attributes {dimension_semantics = [#tpu.dimension_semantics<parallel>], iteration_bounds = array<i64: 2>, scalar_prefetch = 0 : i64, scratch_operands = 0 : i64, tpu.core_type = #tpu.core_type<tc>, window_params = [{transform_indices = @transform_0, window_bounds = array<i64: 8, 32>}, {pipeline_mode = #tpu.pipeline_mode<synchronous>, transform_indices = @transform_1, window_bounds = array<i64: 32, 128>}, {pipeline_mode = #tpu.pipeline_mode<synchronous>, transform_indices = @transform_2, window_bounds = array<i64: 1, 128>}, {pipeline_mode = #tpu.pipeline_mode<synchronous>, transform_indices = @transform_3, window_bounds = array<i64: 128, 32>}, {pipeline_mode = #tpu.pipeline_mode<synchronous>, transform_indices = @transform_4, window_bounds = array<i64: 1, 32>}, {transform_indices = @transform_5, window_bounds = array<i64: 8, 32>}]} {
    %c0 = arith.constant 0 : index
    %c0_0 = arith.constant 0 : index
    %0 = vector.load %arg1[%c0, %c0_0] : memref<8x32xf32, #tpu.memory_space<vmem>>, vector<8x32xf32>
    %c0_1 = arith.constant 0 : index
    %c0_2 = arith.constant 0 : index
    %1 = vector.load %arg2[%c0_1, %c0_2] : memref<32x128xf32, #tpu.memory_space<vmem>>, vector<32x128xf32>
    %cst = arith.constant dense<0.000000e+00> : vector<8x128xf32>
    %2 = tpu.matmul %0, %1, %cst {dimension_numbers = #tpu.dot_dimension_numbers<[1], [0], [0], [1], [0, 0, 1, 1], [], []>} : vector<8x32xf32>, vector<32x128xf32>, vector<8x128xf32> -> vector<8x128xf32>
    %c0_3 = arith.constant 0 : index
    %c0_4 = arith.constant 0 : index
    %3 = vector.load %arg3[%c0_3, %c0_4] : memref<1x128xf32, #tpu.memory_space<vmem>>, vector<1x128xf32>
    %4 = vector.broadcast %3 : vector<1x128xf32> to vector<8x128xf32>
    %5 = arith.addf %2, %4 : vector<8x128xf32>
    %cst_5 = arith.constant 5.000000e-01 : f32
    %6 = vector.broadcast %cst_5 : f32 to vector<8x128xf32>
    %7 = arith.mulf %6, %5 : vector<8x128xf32>
    %cst_6 = arith.constant 4.471500e-02 : f32
    %8 = vector.broadcast %cst_6 : f32 to vector<8x128xf32>
    %9 = arith.mulf %8, %5 : vector<8x128xf32>
    %10 = arith.mulf %9, %5 : vector<8x128xf32>
    %11 = arith.mulf %10, %5 : vector<8x128xf32>
    %12 = arith.addf %5, %11 : vector<8x128xf32>
    %cst_7 = arith.constant 0.797884583 : f32
    %13 = vector.broadcast %cst_7 : f32 to vector<8x128xf32>
    %14 = arith.mulf %13, %12 : vector<8x128xf32>
    %15 = math.tanh %14 : vector<8x128xf32>
    %cst_8 = arith.constant 1.000000e+00 : f32
    %16 = vector.broadcast %cst_8 : f32 to vector<8x128xf32>
    %17 = arith.addf %16, %15 : vector<8x128xf32>
    %18 = arith.mulf %7, %17 : vector<8x128xf32>
    %c0_9 = arith.constant 0 : index
    %c0_10 = arith.constant 0 : index
    %19 = vector.load %arg4[%c0_9, %c0_10] : memref<128x32xf32, #tpu.memory_space<vmem>>, vector<128x32xf32>
    %cst_11 = arith.constant dense<0.000000e+00> : vector<8x32xf32>
    %20 = tpu.matmul %18, %19, %cst_11 {dimension_numbers = #tpu.dot_dimension_numbers<[1], [0], [0], [1], [0, 0, 1, 1], [], []>} : vector<8x128xf32>, vector<128x32xf32>, vector<8x32xf32> -> vector<8x32xf32>
    %c0_12 = arith.constant 0 : index
    %c0_13 = arith.constant 0 : index
    %21 = vector.load %arg5[%c0_12, %c0_13] : memref<1x32xf32, #tpu.memory_space<vmem>>, vector<1x32xf32>
    %22 = vector.broadcast %21 : vector<1x32xf32> to vector<8x32xf32>
    %23 = arith.addf %20, %22 : vector<8x32xf32>
    %c0_14 = arith.constant 0 : index
    %c0_15 = arith.constant 0 : index
    %24 = vector.load %arg6[%c0_14, %c0_15] : memref<8x32xf32, #tpu.memory_space<vmem>>, vector<8x32xf32>
    tpu.vector_store %arg6[%c0_14, %c0_15], %23 {strides = array<i32>} : memref<8x32xf32, #tpu.memory_space<vmem>>, vector<8x32xf32>,
    return
  }
  func.func @transform_0(%arg0: i32) -> (i32, i32) {
    %c0_i32 = arith.constant 0 : i32
    %c0_i32_0 = arith.constant 0 : i32
    return %arg0, %c0_i32 : i32, i32
  }
  func.func @transform_1(%arg0: i32) -> (i32, i32) {
    %c0_i32 = arith.constant 0 : i32
    %c0_i32_0 = arith.constant 0 : i32
    %c0_i32_1 = arith.constant 0 : i32
    return %c0_i32, %c0_i32_0 : i32, i32
  }
  func.func @transform_2(%arg0: i32) -> (i32, i32) {
    %c0_i32 = arith.constant 0 : i32
    %c0_i32_0 = arith.constant 0 : i32
    %c0_i32_1 = arith.constant 0 : i32
    return %c0_i32, %c0_i32_0 : i32, i32
  }
  func.func @transform_3(%arg0: i32) -> (i32, i32) {
    %c0_i32 = arith.constant 0 : i32
    %c0_i32_0 = arith.constant 0 : i32
    %c0_i32_1 = arith.constant 0 : i32
    return %c0_i32, %c0_i32_0 : i32, i32
  }
  func.func @transform_4(%arg0: i32) -> (i32, i32) {
    %c0_i32 = arith.constant 0 : i32
    %c0_i32_0 = arith.constant 0 : i32
    %c0_i32_1 = arith.constant 0 : i32
    return %c0_i32, %c0_i32_0 : i32, i32
  }
  func.func @transform_5(%arg0: i32) -> (i32, i32) {
    %c0_i32 = arith.constant 0 : i32
    %c0_i32_0 = arith.constant 0 : i32
    return %arg0, %c0_i32 : i32, i32
  }
}

</mosaic_0001>

<bundles_post_ra>
// kernel: tpu_custom_call.1
= control target key start
LH: loop header
LB: loop body
LE: loop exit
PB: predicated region body
PF: predicated region fallthrough
CT: control target
= control target key end

     0   :  { %10 = vsyncpa [#allocation3], 0  ;;  %s903_s0 = inlined_call_operand.vmem [shape: f32[16,32], index: 0, kind: input, shape index: {}]   ;;  %s904_s1 = inlined_call_operand.vmem [shape: f32[32,128], index: 1, kind: input, shape index: {}]   ;;  %s905_s2 = inlined_call_operand.vmem [shape: f32[1,128], index: 2, kind: input, shape index: {}]   ;;  %s906_s3 = inlined_call_operand.vmem [shape: f32[128,32], index: 3, kind: input, shape index: {}]   ;;  %s907_s4 = inlined_call_operand.vmem [shape: f32[1,32], index: 4, kind: input, shape index: {}]   ;;  %s908_s5 = inlined_call_operand.hbm [shape: f32[16,32], index: 5, kind: output, shape index: {}]  }
   0x1   :  { %12 = vsyncpa [#allocation3 + $0x1], 0  ;;  %s735_s18 = smov 0   ;;  %s737_s19 = smov 0  }
   0x2   :  { %s739_s20 = smov 0   ;;  %s741_s21 = smov 0  }
   0x3 LB: > { %s756_s22 = sadd.s32 4294967295, %s699_s21   ;;  %s482_s23 = sadd.s32 4294967294, %s699_s21   ;;  %s699_s21 = sphi %s741_s21, %s914_s21   ;;  %s695_s20 = sphi %s739_s20, %s913_s20   ;;  %s691_s19 = sphi %s737_s19, %s912_s19   ;;  %s687_s18 = sphi %s735_s18, %s911_s18  }
   0x4   : > { %s760_s24 = sadd.s32 1, %s699_s21   ;;  %s135_s25 = sadd.s32 1, %s695_s20 }
   0x5   : > { %s132_s26 = ssub.s32 %s699_s21, %s760_s24  ;;  %p145_p0 = scmp.ne.s32.totalorder %s695_s20, %s691_s19 }
   0x6   : > { %p133_p1 = scmp.eq.s32.totalorder %s132_s26, 0  ;;  %p146_p2 = scmp.eq.s32.totalorder %s756_s22, 1 }
   0x7   : > { %p151_p3 = scmp.ne.s32.totalorder %s691_s19, %s687_s18  ;;  %p152_p4 = scmp.eq.s32.totalorder %s482_s23, 1 }
   0x8   : > { %s771_s27 = scalar_select %p133_p1, %s695_s20, %s135_s25  }
   0x9   : > { %p773_p5 = por %p146_p2, %p145_p0  ;;  %p777_p6 = por %p152_p4, %p151_p3 }
   0xa   : > { %p485_p7 = scmp.ge.s32.totalorder %s699_s21, 1  ;;  %p189_p8 = scmp.lt.s32.totalorder %s699_s21, 3 }
   0xc   : > { %p190_p9 = pnand %p485_p7, %p189_p8 }
   0xd   : > { %v221_v0 = vld [vmem:[%s904_s1] sm:$0xff] (!%p190_p9)  ;;  %v222_v1 = vld [vmem:[%s904_s1 + $0x8] sm:$0xff] (!%p190_p9)  ;;  %v223_v2 = vld [vmem:[%s904_s1 + $0x10] sm:$0xff] (!%p190_p9)  ;;  %v701_v3 = vmov (!%p190_p9), 0.0|0.0   ;;  %vm702_vm0 = vmmov (!%p190_p9), 0   ;;  %v703_v6 = vmov (!%p190_p9), 0.0  }
   0xe   : > { %193 = sbr.rel (%p190_p9) target bundleno = 493 (0x1ed), region = 40  ;;  %563 = vmatprep.subr.bf16.mxu0 (!%p190_p9), %v701_v3  ;;  %v564_v4 = vpack.c.bf16 (!%p190_p9), %v222_v1, %v221_v0  ;;  %v224_v5 = vld [vmem:[%s904_s1 + $0x18] sm:$0xff] (!%p190_p9)  ;;  %525 = vmatprep.mubr.msk.f32.mxu0 (!%p190_p9), %vm702_vm0, %v703_v6  ;;  %p216_p10 = scmp.lt.s32.totalorder (!%p190_p9), %s756_s22, 1  ;;  %v315_v7 = vld [vmem:[%s906_s3] sm:$0xff] (!%p190_p9)  ;;  %v316_v8 = vld [vmem:[%s906_s3 + $0x8] sm:$0xff] (!%p190_p9)  ;;  %vm232_vm1 = vcmask (!%p190_p9), 261120  }
   0xf   : > { %569 = vmatprep.subr.bf16.mxu1 (!%p190_p9), %v701_v3  ;;  %v570_v9 = vpack.c.bf16 (!%p190_p9), %v316_v8, %v315_v7  ;;  %560 = vmatprep.mubr.msk.f32.mxu1 (!%p190_p9), %vm702_vm0, %v703_v6  ;;  %v567_v10 = vpack.c.bf16 (!%p190_p9), %v224_v5, %v223_v2  ;;  %v317_v12 = vld [vmem:[%s906_s3 + $0x10] sm:$0xff] (!%p190_p9)  ;;  %v318_v13 = vld [vmem:[%s906_s3 + $0x18] sm:$0xff] (!%p190_p9)  ;;  %v319_v15 = vld [vmem:[%s906_s3 + $0x20] sm:$0xff] (!%p190_p9)  ;;  %s213_s26 = sand.u32 (!%p190_p9), 1, %s691_s19   ;;  %s492_s8 = sshll.u32 (!%p190_p9), %s756_s22, 7 }
  0x10   : > { %565 = vmatpush3.bf16.msra.mxu0 (!%p190_p9), %v564_v4  ;;  %v573_v14 = vpack.c.bf16 (!%p190_p9), %v318_v13, %v317_v12  ;;  %v320_v16 = vld [vmem:[%s906_s3 + $0x28] sm:$0xff] (!%p190_p9)  ;;  %v321_v18 = vld [vmem:[%s906_s3 + $0x30] sm:$0xff] (!%p190_p9)  ;;  %v322_v19 = vld [vmem:[%s906_s3 + $0x38] sm:$0xff] (!%p190_p9)  ;;  %s860_s13 = scalar_lea.hbm (!%p190_p9), %s908_s5, %s492_s8  ;;  %s410_s14 = scalar_lea.sflag (!%p190_p9), [#allocation3], %s213_s26 }
  0x11   : > { %566 = vmatprep.subr.bf16.mxu0 (!%p190_p9), %v701_v3  ;;  %571 = vmatpush3.bf16.msra.mxu1 (!%p190_p9), %v570_v9  ;;  %v576_v17 = vpack.c.bf16 (!%p190_p9), %v320_v16, %v319_v15  ;;  %v579_v20 = vpack.c.bf16 (!%p190_p9), %v322_v19, %v321_v18  ;;  %v323_v21 = vld [vmem:[%s906_s3 + $0x40] sm:$0xff] (!%p190_p9)  ;;  %v324_v22 = vld [vmem:[%s906_s3 + $0x48] sm:$0xff] (!%p190_p9)  ;;  %v325_v24 = vld [vmem:[%s906_s3 + $0x50] sm:$0xff] (!%p190_p9) }
  0x12   : > { %572 = vmatprep.subr.bf16.mxu1 (!%p190_p9), %v701_v3  ;;  %v582_v23 = vpack.c.bf16 (!%p190_p9), %v324_v22, %v323_v21  ;;  %v326_v25 = vld [vmem:[%s906_s3 + $0x58] sm:$0xff] (!%p190_p9)  ;;  %v327_v27 = vld [vmem:[%s906_s3 + $0x60] sm:$0xff] (!%p190_p9)  ;;  %v328_v28 = vld [vmem:[%s906_s3 + $0x68] sm:$0xff] (!%p190_p9) }
  0x13   : > { %v585_v26 = vpack.c.bf16 (!%p190_p9), %v326_v25, %v325_v24  ;;  %v588_v29 = vpack.c.bf16 (!%p190_p9), %v328_v28, %v327_v27  ;;  %v329_v30 = vld [vmem:[%s906_s3 + $0x70] sm:$0xff] (!%p190_p9)  ;;  %v330_v31 = vld [vmem:[%s906_s3 + $0x78] sm:$0xff] (!%p190_p9)  ;;  %v488_v33 = vld [vmem:[%s905_s2] ss:$0 sm:$0xff] (!%p190_p9) }
  0x14   : > { %568 = vmatpush3.bf16.msra.mxu0 (!%p190_p9), %v567_v10  ;;  %v591_v32 = vpack.c.bf16 (!%p190_p9), %v330_v31, %v329_v30  ;;  %v490_v46 = vld [vmem:[%s907_s4] ss:$0 sm:$0xff] (!%p190_p9) }
  0x15   : > { %s217_s17 = scalar_select %p216_p10, %s756_s22, 1  ;;  %574 = vmatpush3.bf16.msra.mxu1 %v573_v14 }
  0x16   : > { %575 = vmatprep.subr.bf16.mxu1 %v701_v3  ;;  %s704_s22 = smov [#allocation2]  }
  0x17   : > { %s487_s23 = sshll.u32 %s217_s17, 3  ;;  %s641_s16 = sshll.u32 %s704_s22, 4  ;;  %s642_s16 = int_to_ptr.vmem [resolvable:$false] %s641_s16 }
  0x18   : > { %s219_s30 = scalar_lea.vmem %s903_s0, %s487_s23  ;;  %s643_s17 = scalar_lea.vmem %s642_s16, 256 }
  0x19   : > { %v220_v11 = vld [vmem:[%s219_s30] sm:$0xff]  ;;  %577 = vmatpush3.bf16.msra.mxu1 %v576_v17  ;;  %s486_s30 = sshll.u32 %s213_s26, 3 }
  0x1a   : > { %526 = vmatmul.mubr.msk.f32.vlgmr.msra.gmra.mrb[0].mxu0 %vm232_vm1, %v220_v11  ;;  %578 = vmatprep.subr.bf16.mxu1 %v701_v3  ;;  %s215_s9 = scalar_lea.vmem [#allocation2], %s486_s30 }
  0x1b   : > { %s423_s10 = sshll.u32 %s215_s9, 4  ;;  %s862_s10 = int_to_ptr.vmem [resolvable:$true] %s423_s10 }
  0x1c   : > { %s637_s15 = scalar_lea.vmem %s862_s10, 128  ;;  %p644_p0 = scmp.lt.s32.totalorder %s862_s10, %s642_s16 }
  0x1d   : > { %580 = vmatpush3.bf16.msra.mxu1 %v579_v20  ;;  %p638_p11 = scmp.ne.s32.totalorder %s862_s10, %s637_s15  ;;  %p645_p1 = scmp.lt.s32.totalorder %s643_s17, %s637_s15 }
  0x1e   : > { %581 = vmatprep.subr.bf16.mxu1 %v701_v3 }
  0x1f   : > { %p639_p12 = pnand %p638_p11, %p773_p5  ;;  %p646_p2 = por %p645_p1, %p644_p0 }
  0x21   : > { %583 = vmatpush3.bf16.msra.mxu1 %v582_v23  ;;  %p640_p13 = pneg %p639_p12 }
  0x22   : > { %584 = vmatprep.subr.bf16.mxu1 %v701_v3 }
  0x23   : > { %p647_p3 = pnand %p646_p2, %p640_p13 }
  0x25   : > { %586 = vmatpush3.bf16.msra.mxu1 %v585_v26 }
  0x26   : > { %587 = vmatprep.subr.bf16.mxu1 %v701_v3 }
  0x29   : > { %589 = vmatpush3.bf16.msra.mxu1 %v588_v29 }
  0x2a   : > { %590 = vmatprep.subr.bf16.mxu1 %v701_v3 }
  0x2d   : > { %592 = vmatpush3.bf16.msra.mxu1 %v591_v32 }
  0xed   : > { %v302_v34 = vpop.f32.mrb[0].mxu0 }
  0xee   : > { %v303_v35 = vadd.f32 %v488_v33, %v302_v34  ;;  %v527_v36 = vpop.f32.mrb[1].mxu0 }
  0xf0   : > { %v307_v37 = vmul.f32 0.044715, %v303_v35  ;;  %v306_v43 = vmul.f32 0.5, %v303_v35 }
  0xf2   : > { %v308_v38 = vmul.f32 %v307_v37, %v303_v35 }
  0xf4   : > { %v309_v39 = vmul.f32 %v308_v38, %v303_v35 }
  0xf6   : > { %v310_v40 = vadd.f32 %v309_v39, %v303_v35 }
  0xf8   : > { %v311_v41 = vmul.f32 0.7978846, %v310_v40 }
  0xfa   : > { %635 = vtanh.f32 %v311_v41 }
 0x104   : > { %v636_v42 = vpop.eup %635 }
 0x105   : > { %v313_v44 = vadd.f32 1.0, %v636_v42 }
 0x107   : > { %v314_v45 = vmul.f32 %v313_v44, %v306_v43 }
 0x109   : > { %561 = vmatmul.mubr.f32.vlgmr.msra.gmra.mrb[0].mxu1 %v314_v45 }
 0x1dc   : > { %v404_v47 = vpop.f32.mrb[0].mxu1 }
 0x1dd   : > { %v405_v48 = vadd.f32 %v490_v46, %v404_v47  ;;  %v562_v49 = vpop.f32.mrb[1].mxu1 }
 0x1df   : > { %408 = vst.msk [vmem:[%s215_s9] sm:$0xff] %vm232_vm1, %v405_v48 }
 0x1e0   : > { %650 = shalt.err (!%p647_p3)
}
 0x1e1   : > { %s651_s23 = scalar_lea.hbm %s860_s13, 128  ;;  %s655_s30 = scalar_lea.hbm %s908_s5, 256 }
 0x1e2   : > { %p652_p4 = scmp.ne.s32.totalorder %s860_s13, %s651_s23  ;;  %p656_p9 = scmp.lt.u32.totalorder %s860_s13, %s908_s5 }
 0x1e3   : > { %p657_p10 = scmp.lt.u32.totalorder %s655_s30, %s651_s23  ;;  %p659_p12 = scmp.lt.u32.totalorder %s651_s23, %s860_s13 }
 0x1e4   : > { %p653_p7 = pnand %p652_p4, %p773_p5 }
 0x1e5   : > { %p658_p11 = por %p657_p10, %p656_p9 }
 0x1e6   : > { %p654_p8 = pneg %p653_p7 }
 0x1e7   : > { %p660_p13 = por %p659_p12, %p658_p11 }
 0x1e9   : > { %p661_p0 = pnand %p660_p13, %p654_p8 }
 0x1eb   : > { %664 = shalt.err (!%p661_p0)
}
 0x1ec   : > { %593 = dma.vmem_to_hbm [thread:$0]  (%p773_p5), %s862_s10, 128, %s860_s13, %s410_s14  }
 0x1ed PF: > { %p599_p1 = scmp.ge.s32.totalorder %s699_s21, 2  ;;  %s435_s8 = sand.u32 1, %s687_s18  }
 0x1ee   : > { %s436_s9 = scalar_lea.sflag [#allocation3], %s435_s8 }
 0x1ef   : > { %p596_p2 = pnand %p599_p1, %p777_p6 }
 0x1f1   : > { %682 = dma.done.wait (!%p596_p2), %s436_s9, 128  }
 0x1f2   : > { %684 = vsyncadd (!%p596_p2), %s436_s9, 4294967168  ;;  %p15_p3 = scmp.ge.s32.totalorder %s760_s24, 4   ;;  %s911_s18 = smov %s691_s19 }
 0x1f3   : > { %s912_s19 = smov %s695_s20  ;;  %s913_s20 = smov %s771_s27 }
 0x1f4   : > { %s914_s21 = smov %s760_s24  ;;  %17 = sbr.rel (!%p15_p3) target bundleno = 3 (0x3), region = 75 }
 0x1fb   :  { %441 = vsyncpa [#allocation3], 1 }
 0x1fc   :  { %443 = vsyncpa [#allocation3 + $0x1], 1 }

</bundles_post_ra>
